<compile_context>
chip_gen: v7x
topology: tpu7x:2x2x1
jax: 0.10.0
libtpu: 0.0.40
codegen_flags: <defaults>
</compile_context>

<pallas_src>
import functools

import jax
import jax.numpy as jnp
from jax.experimental import pallas as pl
from jax.experimental.pallas import tpu as pltpu


def _fnn_kernel(x_ref, w1_ref, b1_ref, w2_ref, b2_ref, w3_ref, b3_ref, o_ref):
    # fc1 (bf16 in, f32 acc) + bias + relu
    h = jnp.dot(x_ref[...], w1_ref[...], preferred_element_type=jnp.float32)
    h = jnp.maximum(h + b1_ref[...], 0.0)

    # fc2 with BN1 folded into w2/b2 (dropout is identity in eval)
    h = jnp.dot(h.astype(jnp.bfloat16), w2_ref[...],
                preferred_element_type=jnp.float32)
    h = jnp.maximum(h + b2_ref[...], 0.0)

    # fc3 with BN2 folded in, padded to 128 lane-dense output columns
    out = jnp.dot(h.astype(jnp.bfloat16), w3_ref[...],
                  preferred_element_type=jnp.float32)
    o_ref[...] = (out + b3_ref[...]).astype(o_ref.dtype)


def _round_up(x, m):
    return ((x + m - 1) // m) * m


@functools.partial(jax.jit, static_argnames=("block_b",))
def fnn_forward(x_nchw, params, *, block_b=512):
    """x_nchw: [B, 1, 28, 28] (PyTorch MNIST layout). Returns [B, 10] f32."""
    B = x_nchw.shape[0]
    x = x_nchw.reshape(B, 28 * 28).astype(jnp.float32)

    (w1, b1, g1, be1, m1, v1,
     w2, b2, g2, be2, m2, v2,
     w3, b3) = params

    eps = 1e-5
    # Eval-mode BatchNorm1d -> per-feature scale/shift, then fold the affine
    # into the *next* Linear (exact because dropout is identity in eval):
    #   (h*s + t) @ W + b == h @ (s[:,None]*W) + (t @ W + b)
    s1 = g1 / jnp.sqrt(v1 + eps)
    t1 = be1 - m1 * s1
    s2 = g2 / jnp.sqrt(v2 + eps)
    t2 = be2 - m2 * s2

    w2f = s1[:, None] * w2
    b2f = b2 + t1 @ w2
    w3f = s2[:, None] * w3
    b3f = b3 + t2 @ w3

    # Lane-dense output: pad fc3 to 128 output columns (zero columns).
    N_OUT, N_PAD = 10, 128
    w3p = jnp.pad(w3f, ((0, 0), (0, N_PAD - N_OUT)))
    b3p = jnp.pad(b3f, (0, N_PAD - N_OUT))

    # Batch tiling: TB multiple of 8 (sublane), pad B up to a multiple of TB.
    TB = min(block_b, max(8, _round_up(B, 8)))
    TB = _round_up(TB, 8)
    Bp = _round_up(B, TB)
    if Bp != B:
        x = jnp.pad(x, ((0, Bp - B), (0, 0)))
    grid = (Bp // TB,)

    D_IN, H1, H2 = 28 * 28, 256, 64

    # bf16 activations/weights, f32 accumulation; biases stay f32.
    args = (x.astype(jnp.bfloat16),
            w1.astype(jnp.bfloat16), b1.reshape(1, H1).astype(jnp.float32),
            w2f.astype(jnp.bfloat16), b2f.reshape(1, H2).astype(jnp.float32),
            w3p.astype(jnp.bfloat16), b3p.reshape(1, N_PAD).astype(jnp.float32))

    in_specs = [
        pl.BlockSpec((TB, D_IN), lambda i: (i, 0)),      # x: tiled over batch
        pl.BlockSpec((D_IN, H1), lambda i: (0, 0)),      # w1: resident
        pl.BlockSpec((1, H1), lambda i: (0, 0)),         # b1
        pl.BlockSpec((H1, H2), lambda i: (0, 0)),        # w2 (BN1 folded)
        pl.BlockSpec((1, H2), lambda i: (0, 0)),         # b2
        pl.BlockSpec((H2, N_PAD), lambda i: (0, 0)),     # w3 (BN2 folded, padded)
        pl.BlockSpec((1, N_PAD), lambda i: (0, 0)),      # b3
    ]
    out_spec = pl.BlockSpec((TB, N_PAD), lambda i: (i, 0))

    flops = 2 * Bp * (D_IN * H1 + H1 * H2 + H2 * N_PAD)
    bytes_accessed = (Bp * D_IN * 2                         # x (bf16)
                      + (D_IN * H1 + H1 * H2 + H2 * N_PAD) * 2  # weights (bf16)
                      + (H1 + H2 + N_PAD) * 4               # biases (f32)
                      + Bp * N_PAD * 4)                      # output (f32)

    out = pl.pallas_call(
        _fnn_kernel,
        out_shape=jax.ShapeDtypeStruct((Bp, N_PAD), jnp.float32),
        grid=grid,
        in_specs=in_specs,
        out_specs=out_spec,
        compiler_params=pltpu.CompilerParams(
            dimension_semantics=("parallel",)),
        cost_estimate=pl.CostEstimate(
            flops=flops, transcendentals=0, bytes_accessed=bytes_accessed),
    )(*args)

    return out[:B, :N_OUT]


def init_params(key):
    """Deterministic init matching nn.Linear / nn.BatchNorm1d shapes.

    Linear weights stored already transposed: [in_features, out_features].
    """
    ks = jax.random.split(key, 6)

    def linear(kw, kb, fan_in, fan_out):
        bound = 1.0 / jnp.sqrt(fan_in)
        w = jax.random.uniform(kw, (fan_in, fan_out), jnp.float32, -bound, bound)
        b = jax.random.uniform(kb, (fan_out,), jnp.float32, -bound, bound)
        return w, b

    w1, b1 = linear(ks[0], ks[1], 28 * 28, 256)
    w2, b2 = linear(ks[2], ks[3], 256, 64)
    w3, b3 = linear(ks[4], ks[5], 64, 10)

    # BatchNorm1d defaults: gamma=1, beta=0, running_mean=0, running_var=1.
    g1, be1 = jnp.ones((256,), jnp.float32), jnp.zeros((256,), jnp.float32)
    m1, v1 = jnp.zeros((256,), jnp.float32), jnp.ones((256,), jnp.float32)
    g2, be2 = jnp.ones((64,), jnp.float32), jnp.zeros((64,), jnp.float32)
    m2, v2 = jnp.zeros((64,), jnp.float32), jnp.ones((64,), jnp.float32)

    return (w1, b1, g1, be1, m1, v1,
            w2, b2, g2, be2, m2, v2,
            w3, b3)


def _reference(x_nchw, params):
    (w1, b1, g1, be1, m1, v1, w2, b2, g2, be2, m2, v2, w3, b3) = params
    eps = 1e-5
    B = x_nchw.shape[0]
    h = x_nchw.reshape(B, 784) @ w1 + b1
    h = jnp.maximum(h, 0.0)
    h = (h - m1) / jnp.sqrt(v1 + eps) * g1 + be1
    h = h @ w2 + b2
    h = jnp.maximum(h, 0.0)
    h = (h - m2) / jnp.sqrt(v2 + eps) * g2 + be2
    return h @ w3 + b3


if __name__ == "__main__":
    key = jax.random.PRNGKey(0)
    k_param, k_x1, k_x2 = jax.random.split(key, 3)

    params = init_params(k_param)

    # Small batch (multiple of 8).
    x = jax.random.normal(k_x1, (8, 1, 28, 28), dtype=jnp.float32)
    out = fnn_forward(x, params)
    jax.block_until_ready(out)
    ref = _reference(x, params)
    assert out.shape == (8, 10)
    assert jnp.allclose(out, ref, atol=5e-2, rtol=5e-2), (
        float(jnp.max(jnp.abs(out - ref))))

    # Ragged batch (exercises tail padding).
    x2 = jax.random.normal(k_x2, (13, 1, 28, 28), dtype=jnp.float32)
    out2 = fnn_forward(x2, params)
    jax.block_until_ready(out2)
    ref2 = _reference(x2, params)
    assert out2.shape == (13, 10)
    assert jnp.allclose(out2, ref2, atol=5e-2, rtol=5e-2), (
        float(jnp.max(jnp.abs(out2 - ref2))))

    print("KERNEL_OK")
</pallas_src>

<mosaic_0001>
module attributes {stable_mosaic.version = 11 : i64} {
  func.func @_fnn_kernel(%arg0: i32, %arg1: memref<8x784xbf16, #tpu.memory_space<vmem>>, %arg2: memref<784x256xbf16, #tpu.memory_space<vmem>>, %arg3: memref<1x256xf32, #tpu.memory_space<vmem>>, %arg4: memref<256x64xbf16, #tpu.memory_space<vmem>>, %arg5: memref<1x64xf32, #tpu.memory_space<vmem>>, %arg6: memref<64x128xbf16, #tpu.memory_space<vmem>>, %arg7: memref<1x128xf32, #tpu.memory_space<vmem>>, %arg8: memref<8x128xf32, #tpu.memory_space<vmem>>) attributes {dimension_semantics = [#tpu.dimension_semantics<parallel>], iteration_bounds = array<i64: 1>, scalar_prefetch = 0 : i64, scratch_operands = 0 : i64, tpu.core_type = #tpu.core_type<tc>, window_params = [{transform_indices = @transform_0, window_bounds = array<i64: 8, 784>}, {pipeline_mode = #tpu.pipeline_mode<synchronous>, transform_indices = @transform_1, window_bounds = array<i64: 784, 256>}, {pipeline_mode = #tpu.pipeline_mode<synchronous>, transform_indices = @transform_2, window_bounds = array<i64: 1, 256>}, {pipeline_mode = #tpu.pipeline_mode<synchronous>, transform_indices = @transform_3, window_bounds = array<i64: 256, 64>}, {pipeline_mode = #tpu.pipeline_mode<synchronous>, transform_indices = @transform_4, window_bounds = array<i64: 1, 64>}, {pipeline_mode = #tpu.pipeline_mode<synchronous>, transform_indices = @transform_5, window_bounds = array<i64: 64, 128>}, {pipeline_mode = #tpu.pipeline_mode<synchronous>, transform_indices = @transform_6, window_bounds = array<i64: 1, 128>}, {transform_indices = @transform_7, window_bounds = array<i64: 8, 128>}]} {
    %c0 = arith.constant 0 : index
    %c0_0 = arith.constant 0 : index
    %0 = vector.load %arg1[%c0, %c0_0] : memref<8x784xbf16, #tpu.memory_space<vmem>>, vector<8x784xbf16>
    %c0_1 = arith.constant 0 : index
    %c0_2 = arith.constant 0 : index
    %1 = vector.load %arg2[%c0_1, %c0_2] : memref<784x256xbf16, #tpu.memory_space<vmem>>, vector<784x256xbf16>
    %cst = arith.constant dense<0.000000e+00> : vector<8x256xf32>
    %2 = tpu.matmul %0, %1, %cst {dimension_numbers = #tpu.dot_dimension_numbers<[1], [0], [0], [1], [0, 0, 1, 1], [], []>} : vector<8x784xbf16>, vector<784x256xbf16>, vector<8x256xf32> -> vector<8x256xf32>
    %c0_3 = arith.constant 0 : index
    %c0_4 = arith.constant 0 : index
    %3 = vector.load %arg3[%c0_3, %c0_4] : memref<1x256xf32, #tpu.memory_space<vmem>>, vector<1x256xf32>
    %4 = vector.broadcast %3 : vector<1x256xf32> to vector<8x256xf32>
    %5 = arith.addf %2, %4 : vector<8x256xf32>
    %cst_5 = arith.constant 0.000000e+00 : f32
    %6 = vector.broadcast %cst_5 : f32 to vector<8x256xf32>
    %7 = arith.maximumf %5, %6 : vector<8x256xf32>
    %8 = arith.truncf %7 : vector<8x256xf32> to vector<8x256xbf16>
    %c0_6 = arith.constant 0 : index
    %c0_7 = arith.constant 0 : index
    %9 = vector.load %arg4[%c0_6, %c0_7] : memref<256x64xbf16, #tpu.memory_space<vmem>>, vector<256x64xbf16>
    %cst_8 = arith.constant dense<0.000000e+00> : vector<8x64xf32>
    %10 = tpu.matmul %8, %9, %cst_8 {dimension_numbers = #tpu.dot_dimension_numbers<[1], [0], [0], [1], [0, 0, 1, 1], [], []>} : vector<8x256xbf16>, vector<256x64xbf16>, vector<8x64xf32> -> vector<8x64xf32>
    %c0_9 = arith.constant 0 : index
    %c0_10 = arith.constant 0 : index
    %11 = vector.load %arg5[%c0_9, %c0_10] : memref<1x64xf32, #tpu.memory_space<vmem>>, vector<1x64xf32>
    %12 = vector.broadcast %11 : vector<1x64xf32> to vector<8x64xf32>
    %13 = arith.addf %10, %12 : vector<8x64xf32>
    %cst_11 = arith.constant 0.000000e+00 : f32
    %14 = vector.broadcast %cst_11 : f32 to vector<8x64xf32>
    %15 = arith.maximumf %13, %14 : vector<8x64xf32>
    %16 = arith.truncf %15 : vector<8x64xf32> to vector<8x64xbf16>
    %c0_12 = arith.constant 0 : index
    %c0_13 = arith.constant 0 : index
    %17 = vector.load %arg6[%c0_12, %c0_13] : memref<64x128xbf16, #tpu.memory_space<vmem>>, vector<64x128xbf16>
    %cst_14 = arith.constant dense<0.000000e+00> : vector<8x128xf32>
    %18 = tpu.matmul %16, %17, %cst_14 {dimension_numbers = #tpu.dot_dimension_numbers<[1], [0], [0], [1], [0, 0, 1, 1], [], []>} : vector<8x64xbf16>, vector<64x128xbf16>, vector<8x128xf32> -> vector<8x128xf32>
    %c0_15 = arith.constant 0 : index
    %c0_16 = arith.constant 0 : index
    %19 = vector.load %arg7[%c0_15, %c0_16] : memref<1x128xf32, #tpu.memory_space<vmem>>, vector<1x128xf32>
    %20 = vector.broadcast %19 : vector<1x128xf32> to vector<8x128xf32>
    %21 = arith.addf %18, %20 : vector<8x128xf32>
    %c0_17 = arith.constant 0 : index
    %c0_18 = arith.constant 0 : index
    %22 = vector.load %arg8[%c0_17, %c0_18] : memref<8x128xf32, #tpu.memory_space<vmem>>, vector<8x128xf32>
    tpu.vector_store %arg8[%c0_17, %c0_18], %21 {strides = array<i32>} : memref<8x128xf32, #tpu.memory_space<vmem>>, vector<8x128xf32>,
    return
  }
  func.func @transform_0(%arg0: i32) -> (i32, i32) {
    %c0_i32 = arith.constant 0 : i32
    %c0_i32_0 = arith.constant 0 : i32
    return %arg0, %c0_i32 : i32, i32
  }
  func.func @transform_1(%arg0: i32) -> (i32, i32) {
    %c0_i32 = arith.constant 0 : i32
    %c0_i32_0 = arith.constant 0 : i32
    %c0_i32_1 = arith.constant 0 : i32
    return %c0_i32, %c0_i32_0 : i32, i32
  }
  func.func @transform_2(%arg0: i32) -> (i32, i32) {
    %c0_i32 = arith.constant 0 : i32
    %c0_i32_0 = arith.constant 0 : i32
    %c0_i32_1 = arith.constant 0 : i32
    return %c0_i32, %c0_i32_0 : i32, i32
  }
  func.func @transform_3(%arg0: i32) -> (i32, i32) {
    %c0_i32 = arith.constant 0 : i32
    %c0_i32_0 = arith.constant 0 : i32
    %c0_i32_1 = arith.constant 0 : i32
    return %c0_i32, %c0_i32_0 : i32, i32
  }
  func.func @transform_4(%arg0: i32) -> (i32, i32) {
    %c0_i32 = arith.constant 0 : i32
    %c0_i32_0 = arith.constant 0 : i32
    %c0_i32_1 = arith.constant 0 : i32
    return %c0_i32, %c0_i32_0 : i32, i32
  }
  func.func @transform_5(%arg0: i32) -> (i32, i32) {
    %c0_i32 = arith.constant 0 : i32
    %c0_i32_0 = arith.constant 0 : i32
    %c0_i32_1 = arith.constant 0 : i32
    return %c0_i32, %c0_i32_0 : i32, i32
  }
  func.func @transform_6(%arg0: i32) -> (i32, i32) {
    %c0_i32 = arith.constant 0 : i32
    %c0_i32_0 = arith.constant 0 : i32
    %c0_i32_1 = arith.constant 0 : i32
    return %c0_i32, %c0_i32_0 : i32, i32
  }
  func.func @transform_7(%arg0: i32) -> (i32, i32) {
    %c0_i32 = arith.constant 0 : i32
    %c0_i32_0 = arith.constant 0 : i32
    return %arg0, %c0_i32 : i32, i32
  }
}

</mosaic_0001>

<bundles_post_ra>
// kernel: fnn_forward.1
= control target key start
LH: loop header
LB: loop body
LE: loop exit
PB: predicated region body
PF: predicated region fallthrough
CT: control target
= control target key end

     0   :  { %s1926_s0 = inlined_call_operand.vmem [shape: bf16[8,784], index: 0, kind: input, shape index: {}]   ;;  %s1927_s1 = inlined_call_operand.vmem [shape: bf16[784,256], index: 1, kind: input, shape index: {}]   ;;  %s1928_s2 = inlined_call_operand.vmem [shape: f32[1,256], index: 2, kind: input, shape index: {}]   ;;  %s1929_s3 = inlined_call_operand.vmem [shape: bf16[256,64], index: 3, kind: input, shape index: {}]   ;;  %s1930_s4 = inlined_call_operand.vmem [shape: f32[1,64], index: 4, kind: input, shape index: {}]   ;;  %s1931_s5 = inlined_call_operand.vmem [shape: bf16[64,128], index: 5, kind: input, shape index: {}]   ;;  %s1932_s6 = inlined_call_operand.vmem [shape: f32[1,128], index: 6, kind: input, shape index: {}]   ;;  %s1933_s7 = inlined_call_operand.hbm [shape: f32[8,128], index: 7, kind: output, shape index: {}]  }
   0x1   :  { %v1285_v0 = vld [vmem:[%s1927_s1 + $0x104] ss:$8 sps:$4 sm:$0xff]   ;;  %v1287_v1 = vld [vmem:[%s1927_s1 + $0x100] ss:$8 sps:$4 sm:$0xff]   ;;  %v1288_v2 = vld [vmem:[%s1927_s1 + $0x114] ss:$8 sps:$4 sm:$0xff]  }
   0x2   :  { %701 = vmatprep.subr.bf16.mxu0 %v1285_v0  ;;  %v1290_v3 = vld [vmem:[%s1927_s1 + $0x110] ss:$8 sps:$4 sm:$0xff]   ;;  %v1291_v4 = vld [vmem:[%s1927_s1 + $0x124] ss:$8 sps:$4 sm:$0xff]   ;;  %v1293_v5 = vld [vmem:[%s1927_s1 + $0x120] ss:$8 sps:$4 sm:$0xff]  }
   0x3   :  { %702 = vmatpush1.bf16.msra.mxu0 %v1287_v1  ;;  %v1294_v6 = vld [vmem:[%s1927_s1 + $0x134] ss:$8 sps:$4 sm:$0xff]   ;;  %v1296_v7 = vld [vmem:[%s1927_s1 + $0x130] ss:$8 sps:$4 sm:$0xff]   ;;  %v1297_v8 = vld [vmem:[%s1927_s1 + $0x144] ss:$8 sps:$4 sm:$0xff]  }
   0x4   :  { %703 = vmatprep.subr.bf16.mxu0 %v1288_v2  ;;  %v1299_v9 = vld [vmem:[%s1927_s1 + $0x140] ss:$8 sps:$4 sm:$0xff]   ;;  %v1300_v10 = vld [vmem:[%s1927_s1 + $0x154] ss:$8 sps:$4 sm:$0xff]   ;;  %v1302_v11 = vld [vmem:[%s1927_s1 + $0x150] ss:$8 sps:$4 sm:$0xff]  }
   0x5   :  { %v1327_v12 = vld [vmem:[%s1927_s1 + $0x4] ss:$8 sps:$4 sm:$0xff]   ;;  %v1329_v13 = vld [vmem:[%s1927_s1] ss:$8 sps:$4 sm:$0xff]   ;;  %v1333_v15 = vld [vmem:[%s1927_s1 + $0x14] ss:$8 sps:$4 sm:$0xff]  }
   0x6   :  { %v1303_v14 = vld [vmem:[%s1927_s1 + $0x164] ss:$8 sps:$4 sm:$0xff]   ;;  %660 = vmatprep.subr.bf16.mxu1 %v1327_v12  ;;  %v1335_v16 = vld [vmem:[%s1927_s1 + $0x10] ss:$8 sps:$4 sm:$0xff]   ;;  %v1305_v17 = vld [vmem:[%s1927_s1 + $0x160] ss:$8 sps:$4 sm:$0xff]  }
   0x7   :  { %704 = vmatpush1.bf16.msra.mxu0 %v1290_v3  ;;  %661 = vmatpush1.bf16.msra.mxu1 %v1329_v13  ;;  %v1306_v18 = vld [vmem:[%s1927_s1 + $0x174] ss:$8 sps:$4 sm:$0xff]   ;;  %v1339_v19 = vld [vmem:[%s1927_s1 + $0x24] ss:$8 sps:$4 sm:$0xff]   ;;  %v1308_v21 = vld [vmem:[%s1927_s1 + $0x170] ss:$8 sps:$4 sm:$0xff]  }
   0x8   :  { %705 = vmatprep.subr.bf16.mxu0 %v1291_v4  ;;  %662 = vmatprep.subr.bf16.mxu1 %v1333_v15  ;;  %v1590_v20 = vld [vmem:[%s1926_s0 + $0x8] sm:$0xff]  ;;  %v1347_v24 = vld [vmem:[%s1927_s1 + $0x34] ss:$8 sps:$4 sm:$0xff]   ;;  %v1349_v27 = vld [vmem:[%s1927_s1 + $0x30] ss:$8 sps:$4 sm:$0xff]  }
   0x9   :  { %v1341_v22 = vld [vmem:[%s1927_s1 + $0x20] ss:$8 sps:$4 sm:$0xff]   ;;  %v1106_v23 = vcombine.high %v1590_v20, %v1590_v20  ;;  %v1309_v25 = vld [vmem:[%s1927_s1 + $0x184] ss:$8 sps:$4 sm:$0xff]   ;;  %v1312_v29 = vld [vmem:[%s1927_s1 + $0x194] ss:$8 sps:$4 sm:$0xff]   ;;  %v1105_v60 = vcombine.low %v1590_v20, %v1590_v20 }
   0xa   :  { %v1311_v26 = vld [vmem:[%s1927_s1 + $0x180] ss:$8 sps:$4 sm:$0xff]   ;;  %v1353_v28 = vld [vmem:[%s1927_s1 + $0x44] ss:$8 sps:$4 sm:$0xff]   ;;  %v1314_v30 = vld [vmem:[%s1927_s1 + $0x190] ss:$8 sps:$4 sm:$0xff]  }
   0xb   :  { %706 = vmatpush1.bf16.msra.mxu0 %v1293_v5  ;;  %663 = vmatpush1.bf16.msra.mxu1 %v1335_v16  ;;  %v1355_v31 = vld [vmem:[%s1927_s1 + $0x40] ss:$8 sps:$4 sm:$0xff]   ;;  %v1359_v32 = vld [vmem:[%s1927_s1 + $0x54] ss:$8 sps:$4 sm:$0xff]   ;;  %v1315_v33 = vld [vmem:[%s1927_s1 + $0x1a4] ss:$8 sps:$4 sm:$0xff]  }
   0xc   :  { %707 = vmatprep.subr.bf16.mxu0 %v1294_v6  ;;  %664 = vmatprep.subr.bf16.mxu1 %v1339_v19  ;;  %v1317_v34 = vld [vmem:[%s1927_s1 + $0x1a0] ss:$8 sps:$4 sm:$0xff]   ;;  %v1361_v35 = vld [vmem:[%s1927_s1 + $0x50] ss:$8 sps:$4 sm:$0xff]   ;;  %v1365_v36 = vld [vmem:[%s1927_s1 + $0x64] ss:$8 sps:$4 sm:$0xff]  }
   0xd   :  { %733 = vmatprep.mubr.bf16.mxu0 %v1106_v23  ;;  %v1318_v37 = vld [vmem:[%s1927_s1 + $0x1b4] ss:$8 sps:$4 sm:$0xff]   ;;  %v1320_v38 = vld [vmem:[%s1927_s1 + $0x1b0] ss:$8 sps:$4 sm:$0xff]   ;;  %v1367_v39 = vld [vmem:[%s1927_s1 + $0x60] ss:$8 sps:$4 sm:$0xff]  }
   0xe   :  { %v1371_v40 = vld [vmem:[%s1927_s1 + $0x74] ss:$8 sps:$4 sm:$0xff]   ;;  %v1321_v41 = vld [vmem:[%s1927_s1 + $0x1c4] ss:$8 sps:$4 sm:$0xff]   ;;  %v1323_v42 = vld [vmem:[%s1927_s1 + $0x1c0] ss:$8 sps:$4 sm:$0xff]  }
   0xf   :  { %708 = vmatpush1.bf16.msra.mxu0 %v1296_v7  ;;  %665 = vmatpush1.bf16.msra.mxu1 %v1341_v22  ;;  %v1373_v43 = vld [vmem:[%s1927_s1 + $0x70] ss:$8 sps:$4 sm:$0xff]   ;;  %v1377_v44 = vld [vmem:[%s1927_s1 + $0x84] ss:$8 sps:$4 sm:$0xff]   ;;  %v1324_v45 = vld [vmem:[%s1927_s1 + $0x1d4] ss:$8 sps:$4 sm:$0xff]  }
  0x10   :  { %709 = vmatprep.subr.bf16.mxu0 %v1297_v8  ;;  %666 = vmatprep.subr.bf16.mxu1 %v1347_v24  ;;  %v1326_v46 = vld [vmem:[%s1927_s1 + $0x1d0] ss:$8 sps:$4 sm:$0xff]   ;;  %v1379_v47 = vld [vmem:[%s1927_s1 + $0x80] ss:$8 sps:$4 sm:$0xff]   ;;  %v1383_v48 = vld [vmem:[%s1927_s1 + $0x94] ss:$8 sps:$4 sm:$0xff]  }
  0x11   :  { %v1330_v49 = vld [vmem:[%s1927_s1 + $0x1e4] ss:$8 sps:$4 sm:$0xff]   ;;  %v1332_v50 = vld [vmem:[%s1927_s1 + $0x1e0] ss:$8 sps:$4 sm:$0xff]   ;;  %v1385_v51 = vld [vmem:[%s1927_s1 + $0x90] ss:$8 sps:$4 sm:$0xff]  }
  0x12   :  { %v1389_v52 = vld [vmem:[%s1927_s1 + $0xa4] ss:$8 sps:$4 sm:$0xff]   ;;  %v1336_v53 = vld [vmem:[%s1927_s1 + $0x1f4] ss:$8 sps:$4 sm:$0xff]   ;;  %v1338_v54 = vld [vmem:[%s1927_s1 + $0x1f0] ss:$8 sps:$4 sm:$0xff]  }
  0x13   :  { %710 = vmatpush1.bf16.msra.mxu0 %v1299_v9  ;;  %667 = vmatpush1.bf16.msra.mxu1 %v1349_v27  ;;  %v1391_v55 = vld [vmem:[%s1927_s1 + $0xa0] ss:$8 sps:$4 sm:$0xff]   ;;  %v1395_v56 = vld [vmem:[%s1927_s1 + $0xb4] ss:$8 sps:$4 sm:$0xff]   ;;  %v1346_v57 = vld [vmem:[%s1927_s1 + $0x204] ss:$8 sps:$4 sm:$0xff]  }
  0x14   :  { %711 = vmatprep.subr.bf16.mxu0 %v1300_v10  ;;  %668 = vmatprep.subr.bf16.mxu1 %v1353_v28  ;;  %v1344_v58 = vld [vmem:[%s1927_s1 + $0x200] ss:$8 sps:$4 sm:$0xff]   ;;  %v1397_v61 = vld [vmem:[%s1927_s1 + $0xb0] ss:$8 sps:$4 sm:$0xff]   ;;  %v1401_v63 = vld [vmem:[%s1927_s1 + $0xc4] ss:$8 sps:$4 sm:$0xff]  }
  0x15   :  { %v28_v59 = vld [vmem:[%s1926_s0] sm:$0xff]  ;;  %v1352_v0 = vld [vmem:[%s1927_s1 + $0x214] ss:$8 sps:$4 sm:$0xff]   ;;  %v1350_v1 = vld [vmem:[%s1927_s1 + $0x210] ss:$8 sps:$4 sm:$0xff]  }
  0x16   :  { %v1104_v62 = vcombine.high %v28_v59, %v28_v59  ;;  %v1403_v2 = vld [vmem:[%s1927_s1 + $0xc0] ss:$8 sps:$4 sm:$0xff]   ;;  %v1728_v3 = vld [vmem:[%s1926_s0 + $0x10] sm:$0xff]  ;;  %v1358_v6 = vld [vmem:[%s1927_s1 + $0x224] ss:$8 sps:$4 sm:$0xff]   ;;  %v1103_v20 = vcombine.low %v28_v59, %v28_v59 }
  0x17   :  { %712 = vmatpush1.bf16.msra.mxu0 %v1302_v11  ;;  %669 = vmatpush1.bf16.msra.mxu1 %v1355_v31  ;;  %v1407_v4 = vld [vmem:[%s1927_s1 + $0xd4] ss:$8 sps:$4 sm:$0xff]   ;;  %v1108_v5 = vcombine.high %v1728_v3, %v1728_v3  ;;  %v1356_v7 = vld [vmem:[%s1927_s1 + $0x220] ss:$8 sps:$4 sm:$0xff]   ;;  %v1409_v9 = vld [vmem:[%s1927_s1 + $0xd0] ss:$8 sps:$4 sm:$0xff]  }
  0x18   :  { %713 = vmatprep.subr.bf16.mxu0 %v1303_v14  ;;  %670 = vmatprep.subr.bf16.mxu1 %v1359_v32  ;;  %v1364_v8 = vld [vmem:[%s1927_s1 + $0x234] ss:$8 sps:$4 sm:$0xff]   ;;  %v1413_v10 = vld [vmem:[%s1927_s1 + $0xe4] ss:$8 sps:$4 sm:$0xff]   ;;  %v1415_v11 = vld [vmem:[%s1927_s1 + $0xe0] ss:$8 sps:$4 sm:$0xff]  }
  0x19   :  { %692 = vmatprep.mubr.bf16.mxu1 %v1104_v62  ;;  %v1362_v12 = vld [vmem:[%s1927_s1 + $0x230] ss:$8 sps:$4 sm:$0xff]   ;;  %v1419_v13 = vld [vmem:[%s1927_s1 + $0xf4] ss:$8 sps:$4 sm:$0xff]   ;;  %v1370_v14 = vld [vmem:[%s1927_s1 + $0x244] ss:$8 sps:$4 sm:$0xff]  }
  0x1a   :  { %v1421_v15 = vld [vmem:[%s1927_s1 + $0xf0] ss:$8 sps:$4 sm:$0xff]   ;;  %v1368_v16 = vld [vmem:[%s1927_s1 + $0x240] ss:$8 sps:$4 sm:$0xff]  }
  0x1b   :  { %714 = vmatpush1.bf16.msra.mxu0 %v1305_v17  ;;  %671 = vmatpush1.bf16.msra.mxu1 %v1361_v35  ;;  %v1432_v17 = vld [vmem:[%s1927_s1 + $0x304] ss:$8 sps:$4 sm:$0xff]   ;;  %v1430_v19 = vld [vmem:[%s1927_s1 + $0x300] ss:$8 sps:$4 sm:$0xff]  }
  0x1c   :  { %715 = vmatprep.subr.bf16.mxu0 %v1306_v18  ;;  %672 = vmatprep.subr.bf16.mxu1 %v1365_v36  ;;  %v1376_v18 = vld [vmem:[%s1927_s1 + $0x254] ss:$8 sps:$4 sm:$0xff]  }
  0x1f   :  { %716 = vmatpush1.bf16.msra.mxu0 %v1308_v21  ;;  %673 = vmatpush1.bf16.msra.mxu1 %v1367_v39 }
  0x20   :  { %717 = vmatprep.subr.bf16.mxu0 %v1309_v25  ;;  %674 = vmatprep.subr.bf16.mxu1 %v1371_v40 }
  0x23   :  { %718 = vmatpush1.bf16.msra.mxu0 %v1311_v26  ;;  %675 = vmatpush1.bf16.msra.mxu1 %v1373_v43 }
  0x24   :  { %719 = vmatprep.subr.bf16.mxu0 %v1312_v29  ;;  %676 = vmatprep.subr.bf16.mxu1 %v1377_v44 }
  0x27   :  { %720 = vmatpush1.bf16.msra.mxu0 %v1314_v30  ;;  %677 = vmatpush1.bf16.msra.mxu1 %v1379_v47 }
  0x28   :  { %721 = vmatprep.subr.bf16.mxu0 %v1315_v33  ;;  %678 = vmatprep.subr.bf16.mxu1 %v1383_v48 }
  0x2b   :  { %722 = vmatpush1.bf16.msra.mxu0 %v1317_v34  ;;  %679 = vmatpush1.bf16.msra.mxu1 %v1385_v51 }
  0x2c   :  { %723 = vmatprep.subr.bf16.mxu0 %v1318_v37  ;;  %680 = vmatprep.subr.bf16.mxu1 %v1389_v52 }
  0x2f   :  { %724 = vmatpush1.bf16.msra.mxu0 %v1320_v38  ;;  %681 = vmatpush1.bf16.msra.mxu1 %v1391_v55 }
  0x30   :  { %725 = vmatprep.subr.bf16.mxu0 %v1321_v41  ;;  %682 = vmatprep.subr.bf16.mxu1 %v1395_v56 }
  0x33   :  { %726 = vmatpush1.bf16.msra.mxu0 %v1323_v42  ;;  %683 = vmatpush1.bf16.msra.mxu1 %v1397_v61 }
  0x34   :  { %727 = vmatprep.subr.bf16.mxu0 %v1324_v45  ;;  %684 = vmatprep.subr.bf16.mxu1 %v1401_v63 }
  0x37   :  { %728 = vmatpush1.bf16.msra.mxu0 %v1326_v46  ;;  %685 = vmatpush1.bf16.msra.mxu1 %v1403_v2 }
  0x38   :  { %729 = vmatprep.subr.bf16.mxu0 %v1330_v49  ;;  %686 = vmatprep.subr.bf16.mxu1 %v1407_v4 }
  0x3b   :  { %730 = vmatpush1.bf16.msra.mxu0 %v1332_v50  ;;  %687 = vmatpush1.bf16.msra.mxu1 %v1409_v9 }
  0x3c   :  { %731 = vmatprep.subr.bf16.mxu0 %v1336_v53  ;;  %688 = vmatprep.subr.bf16.mxu1 %v1413_v10 }
  0x3f   :  { %732 = vmatpush1.bf16.msra.mxu0 %v1338_v54  ;;  %689 = vmatpush1.bf16.msra.mxu1 %v1415_v11 }
  0x40   :  { %742 = vmatprep.subr.bf16.mxu0 %v1346_v57  ;;  %690 = vmatprep.subr.bf16.mxu1 %v1419_v13 }
  0x42   :  { %734 = vmatmul.mubr.bf16.vlgmr.msra.gmra.mrb[0].mxu0 %v1105_v60 }
  0x43   :  { %743 = vmatpush1.bf16.msra.mxu0 %v1344_v58  ;;  %774 = vmatprep.mubr.bf16.mxu0 %v1108_v5 }
  0x44   :  { %744 = vmatprep.subr.bf16.mxu0 %v1352_v0  ;;  %691 = vmatpush1.bf16.msra.mxu1 %v1421_v15 }
  0x47   :  { %745 = vmatpush1.bf16.msra.mxu0 %v1350_v1 }
  0x48   :  { %746 = vmatprep.subr.bf16.mxu0 %v1358_v6 }
  0x4b   :  { %747 = vmatpush1.bf16.msra.mxu0 %v1356_v7 }
  0x4c   :  { %748 = vmatprep.subr.bf16.mxu0 %v1364_v8 }
  0x4f   :  { %749 = vmatpush1.bf16.msra.mxu0 %v1362_v12 }
  0x50   :  { %750 = vmatprep.subr.bf16.mxu0 %v1370_v14 }
  0x51   :  { %12 = vsyncpa [#allocation3], 0  ;;  %v1374_v21 = vld [vmem:[%s1927_s1 + $0x250] ss:$8 sps:$4 sm:$0xff]   ;;  %783 = vmatprep.subr.bf16.mxu1 %v1432_v17  ;;  %v1439_v22 = vld [vmem:[%s1929_s3 + $0x40] sm:$0xff]   ;;  %693 = vmatmul.mubr.bf16.vlgmr.msra.gmra.mrb[0].mxu1 %v1103_v20  ;;  %v1483_v24 = vmov 0   ;;  %v1107_v50 = vcombine.low %v1728_v3, %v1728_v3  ;;  %v132_v6 = vlaneseq }
  0x52   :  { %v1382_v23 = vld [vmem:[%s1927_s1 + $0x264] ss:$8 sps:$4 sm:$0xff]   ;;  %784 = vmatpush1.bf16.msra.mxu1 %v1430_v19  ;;  %815 = vmatprep.mubr.bf16.mxu1 %v1483_v24  ;;  %v1380_v25 = vld [vmem:[%s1927_s1 + $0x260] ss:$8 sps:$4 sm:$0xff]   ;;  %v1388_v26 = vld [vmem:[%s1927_s1 + $0x274] ss:$8 sps:$4 sm:$0xff]  }
  0x53   :  { %751 = vmatpush1.bf16.msra.mxu0 %v1368_v16  ;;  %1232 = vmatprep.subr.bf16.mxu1 %v1439_v22  ;;  %v1438_v27 = vld [vmem:[%s1926_s0 + $0x18] ss:$0 sps:$4 sm:$0xff]   ;;  %vm656_vm0 = vcmask 130048   ;;  %v1440_v28 = vld [vmem:[%s1929_s3] sm:$0xff]   ;;  %v1441_v30 = vld [vmem:[%s1929_s3 + $0x48] sm:$0xff]   ;;  %v1484_v61 = vmov 0.0  }
  0x54   :  { %752 = vmatprep.subr.bf16.mxu0 %v1376_v18  ;;  %v1386_v29 = vld [vmem:[%s1927_s1 + $0x270] ss:$8 sps:$4 sm:$0xff]   ;;  %v1394_v31 = vld [vmem:[%s1927_s1 + $0x284] ss:$8 sps:$4 sm:$0xff]   ;;  %v1392_v33 = vld [vmem:[%s1927_s1 + $0x280] ss:$8 sps:$4 sm:$0xff]  }
  0x55   :  { %v1442_v32 = vld [vmem:[%s1929_s3 + $0x8] sm:$0xff]   ;;  %v1443_v34 = vld [vmem:[%s1929_s3 + $0x50] sm:$0xff]   ;;  %v1445_v51 = vld [vmem:[%s1929_s3 + $0x58] sm:$0xff]   ;;  %v133_v7 = vshrl.u32 %v132_v6, 7  ;;  %vm1485_vm1 = vmmov 0   ;;  %vm1044_vm2 = vcmask 523264  }
  0x56   :  { %v1400_v35 = vld [vmem:[%s1927_s1 + $0x294] ss:$8 sps:$4 sm:$0xff]   ;;  %v1398_v37 = vld [vmem:[%s1927_s1 + $0x290] ss:$8 sps:$4 sm:$0xff]   ;;  %v1406_v38 = vld [vmem:[%s1927_s1 + $0x2a4] ss:$8 sps:$4 sm:$0xff]  }
  0x57   :  { %753 = vmatpush1.bf16.msra.mxu0 %v1374_v21  ;;  %v1444_v36 = vld [vmem:[%s1929_s3 + $0x10] sm:$0xff]   ;;  %v1404_v39 = vld [vmem:[%s1927_s1 + $0x2a0] ss:$8 sps:$4 sm:$0xff]   ;;  %v1418_v42 = vld [vmem:[%s1927_s1 + $0x2c4] ss:$8 sps:$4 sm:$0xff]   ;;  %v134_v8 = vsub.s32 0, %v133_v7 }
  0x58   :  { %754 = vmatprep.subr.bf16.mxu0 %v1382_v23  ;;  %v1412_v40 = vld [vmem:[%s1927_s1 + $0x2b4] ss:$8 sps:$4 sm:$0xff]   ;;  %v1410_v41 = vld [vmem:[%s1927_s1 + $0x2b0] ss:$8 sps:$4 sm:$0xff]   ;;  %v1416_v43 = vld [vmem:[%s1927_s1 + $0x2c0] ss:$8 sps:$4 sm:$0xff]  }
  0x59   :  { %1208 = vmatmul.mubr.msk.bf16.vlgmr.msra.gmra.mrb[4].mxu1 %vm656_vm0, %v1438_v27  ;;  %v1424_v44 = vld [vmem:[%s1927_s1 + $0x2d4] ss:$8 sps:$4 sm:$0xff]   ;;  %v1422_v45 = vld [vmem:[%s1927_s1 + $0x2d0] ss:$8 sps:$4 sm:$0xff]   ;;  %v1429_v46 = vld [vmem:[%s1927_s1 + $0x2e4] ss:$8 sps:$4 sm:$0xff]  }
  0x5a   :  { %1233 = vmatpush3.bf16.msra.mxu1 %v1440_v28  ;;  %v1427_v47 = vld [vmem:[%s1927_s1 + $0x2e0] ss:$8 sps:$4 sm:$0xff]   ;;  %v1435_v48 = vld [vmem:[%s1927_s1 + $0x2f4] ss:$8 sps:$4 sm:$0xff]   ;;  %v1433_v49 = vld [vmem:[%s1927_s1 + $0x2f0] ss:$8 sps:$4 sm:$0xff]  }
  0x5b   :  { %755 = vmatpush1.bf16.msra.mxu0 %v1380_v25  ;;  %1234 = vmatprep.subr.bf16.mxu1 %v1441_v30  ;;  %v1446_v52 = vld [vmem:[%s1929_s3 + $0x18] sm:$0xff]   ;;  %v1447_v53 = vld [vmem:[%s1929_s3 + $0x60] sm:$0xff]   ;;  %v1449_v55 = vld [vmem:[%s1929_s3 + $0x68] sm:$0xff]   ;;  %v138_v10 = vsub.s32 1, %v133_v7 }
  0x5c   :  { %756 = vmatprep.subr.bf16.mxu0 %v1388_v26  ;;  %v1448_v54 = vld [vmem:[%s1929_s3 + $0x20] sm:$0xff]   ;;  %v1450_v56 = vld [vmem:[%s1929_s3 + $0x28] sm:$0xff]   ;;  %v1451_v57 = vld [vmem:[%s1929_s3 + $0x70] sm:$0xff]  }
  0x5d   :  { %v1452_v58 = vld [vmem:[%s1929_s3 + $0x30] sm:$0xff]   ;;  %v1453_v59 = vld [vmem:[%s1929_s3 + $0x78] sm:$0xff]   ;;  %v130_v9 = vld [vmem:[%s1928_s2] sm:$0x3] }
  0x5e   :  { %1235 = vmatpush3.bf16.msra.mxu1 %v1442_v32  ;;  %v1454_v60 = vld [vmem:[%s1929_s3 + $0x38] sm:$0xff]   ;;  %v135_v11 = vrot.slane %v130_v9, %v134_v8  ;;  %v139_v12 = vrot.slane %v130_v9, %v138_v10  ;;  %v1455_v26 = vld [vmem:[%s1931_s5] sm:$0xff]   ;;  %v1456_v28 = vld [vmem:[%s1931_s5 + $0x8] sm:$0xff]  }
  0x5f   :  { %757 = vmatpush1.bf16.msra.mxu0 %v1386_v29  ;;  %1236 = vmatprep.subr.bf16.mxu1 %v1443_v34  ;;  %v1457_v29 = vld [vmem:[%s1931_s5 + $0x10] sm:$0xff]   ;;  %v1458_v30 = vld [vmem:[%s1931_s5 + $0x18] sm:$0xff]   ;;  %v1209_v32 = vld [vmem:[%s1930_s4] ss:$0 sm:$0xff]  ;;  %s1486_s5 = smov [#allocation2]  }
  0x60   :  { %758 = vmatprep.subr.bf16.mxu0 %v1394_v31  ;;  %s1095_s14 = sshll.u32 %s1486_s5, 4  ;;  %s1096_s14 = int_to_ptr.vmem [resolvable:$true] %s1095_s14 }
  0x61   :  { %s1459_s4 = scalar_lea.vmem %s1096_s14, 128  ;;  %p1464_p1 = scmp.lt.s32.totalorder %s1096_s14, %s1096_s14 }
  0x62   :  { %1237 = vmatpush3.bf16.msra.mxu1 %v1444_v36  ;;  %p1460_p0 = scmp.ne.s32.totalorder %s1096_s14, %s1459_s4  ;;  %p1465_p2 = scmp.lt.s32.totalorder %s1459_s4, %s1459_s4 }
  0x63   :  { %759 = vmatpush1.bf16.msra.mxu0 %v1392_v33  ;;  %1238 = vmatprep.subr.bf16.mxu1 %v1445_v51 }
  0x64   :  { %760 = vmatprep.subr.bf16.mxu0 %v1400_v35  ;;  %p1466_p3 = por %p1465_p2, %p1464_p1 }
  0x66   :  { %1239 = vmatpush3.bf16.msra.mxu1 %v1446_v52  ;;  %p1467_p4 = pnand %p1466_p3, %p1460_p0 }
  0x67   :  { %761 = vmatpush1.bf16.msra.mxu0 %v1398_v37  ;;  %1240 = vmatprep.subr.bf16.mxu1 %v1447_v53 }
  0x68   :  { %762 = vmatprep.subr.bf16.mxu0 %v1406_v38 }
  0x6a   :  { %1241 = vmatpush3.bf16.msra.mxu1 %v1448_v54 }
  0x6b   :  { %763 = vmatpush1.bf16.msra.mxu0 %v1404_v39  ;;  %1242 = vmatprep.subr.bf16.mxu1 %v1449_v55 }
  0x6c   :  { %764 = vmatprep.subr.bf16.mxu0 %v1412_v40  ;;  %v1226_v40 = vld [vmem:[%s1932_s6] ss:$0 sm:$0xff] }
  0x6e   :  { %1243 = vmatpush3.bf16.msra.mxu1 %v1450_v56 }
  0x6f   :  { %765 = vmatpush1.bf16.msra.mxu0 %v1410_v41  ;;  %1244 = vmatprep.subr.bf16.mxu1 %v1451_v57 }
  0x70   :  { %766 = vmatprep.subr.bf16.mxu0 %v1418_v42 }
  0x72   :  { %1245 = vmatpush3.bf16.msra.mxu1 %v1452_v58 }
  0x73   :  { %767 = vmatpush1.bf16.msra.mxu0 %v1416_v43  ;;  %1246 = vmatprep.subr.bf16.mxu1 %v1453_v59 }
  0x74   :  { %768 = vmatprep.subr.bf16.mxu0 %v1424_v44 }
  0x76   :  { %1247 = vmatpush3.bf16.msra.mxu1 %v1454_v60 }
  0x77   :  { %769 = vmatpush1.bf16.msra.mxu0 %v1422_v45  ;;  %1259 = vmatprep.subr.bf16.mxu1 %v1484_v61 }
  0x78   :  { %770 = vmatprep.subr.bf16.mxu0 %v1429_v46 }
  0x7b   :  { %771 = vmatpush1.bf16.msra.mxu0 %v1427_v47 }
  0x7c   :  { %772 = vmatprep.subr.bf16.mxu0 %v1435_v48 }
  0x7f   :  { %773 = vmatpush1.bf16.msra.mxu0 %v1433_v49 }
  0x82   :  { %775 = vmatmul.mubr.bf16.vlgmr.msra.gmra.mrb[0].mxu0 %v1107_v50 }
 0x124   :  { %v694_v62 = vpop.f32.mrb[0].mxu1 }
 0x125   :  { %v696_v63 = vpop.f32.mrb[1].mxu1  ;;  %v695_v13 = vadd.f32 %v694_v62, %v135_v11 }
 0x126   :  { %v698_v0 = vpop.f32.mrb[2].mxu1  ;;  %v697_v14 = vadd.f32 %v696_v63, %v139_v12 }
 0x127   :  { %v699_v1 = vpop.f32.mrb[3].mxu1 }
 0x12c   :  { %v817_v2 = vpop.f32.mrb[4].mxu1 }
 0x12d   :  { %v819_v3 = vpop.f32.mrb[5].mxu1 }
 0x12e   :  { %v821_v4 = vpop.f32.mrb[6].mxu1 }
 0x12f   :  { %v822_v5 = vpop.f32.mrb[7].mxu1 }
 0x155   :  { %v776_v15 = vpop.f32.mrb[0].mxu0 }
 0x156   :  { %v1272_v16 = vadd.f32 %v776_v15, %v695_v13  ;;  %v778_v17 = vpop.f32.mrb[1].mxu0 }
 0x157   :  { %v1275_v18 = vadd.f32 %v778_v17, %v697_v14  ;;  %v780_v19 = vpop.f32.mrb[2].mxu0 }
 0x158   :  { %v1273_v20 = vadd.f32 %v1272_v16, %v817_v2  ;;  %v781_v21 = vpop.f32.mrb[3].mxu0 }
 0x159   :  { %v1276_v22 = vadd.f32 %v1275_v18, %v819_v3 }
 0x15a   :  { %v824_v23 = vmax.f32 %v1273_v20, 0.0 }
 0x15b   :  { %v825_v24 = vmax.f32 %v1276_v22, 0.0 }
 0x15c   :  { %v826_v27 = vpack.c.bf16 %v824_v23, %v824_v23 }
 0x15d   :  { %v827_v25 = vpack.c.bf16 %v825_v24, %v825_v24 }
 0x15f   :  { %995 = vmatprep.mubr.bf16.mxu1 %v827_v25 }
 0x160   :  { %996 = vmatmul.mubr.bf16.vlgmr.msra.gmra.mrb[8].mxu1 %v826_v27 }
 0x161   :  { %1260 = vmatpush3.bf16.msra.mxu1 %v1455_v26  ;;  %1267 = vmatprep.mubr.msk.bf16.mxu1 %vm1485_vm1, %v1484_v61 }
 0x162   :  { %1261 = vmatprep.subr.bf16.mxu1 %v1484_v61 }
 0x165   :  { %1262 = vmatpush3.bf16.msra.mxu1 %v1456_v28 }
 0x166   :  { %1263 = vmatprep.subr.bf16.mxu1 %v1484_v61 }
 0x169   :  { %1264 = vmatpush3.bf16.msra.mxu1 %v1457_v29 }
 0x16a   :  { %1265 = vmatprep.subr.bf16.mxu1 %v1484_v61 }
 0x16d   :  { %1266 = vmatpush3.bf16.msra.mxu1 %v1458_v30 }
 0x233   :  { %v1248_v31 = vpop.f32.mrb[8].mxu1 }
 0x234   :  { %v1249_v33 = vpop.f32.mrb[9].mxu1 }
 0x235   :  { %v1250_v34 = vadd.f32 %v1249_v33, %v1248_v31  ;;  %v1251_v35 = vpop.f32.mrb[10].mxu1 }
 0x236   :  { %v1252_v36 = vpop.f32.mrb[11].mxu1 }
 0x237   :  { %v998_v37 = vadd.f32 %v1250_v34, %v1209_v32 }
 0x239   :  { %v1003_v38 = vmax.f32 %v998_v37, 0.0 }
 0x23b   :  { %v1004_v39 = vpack.c.bf16 %v1003_v38, %v1003_v38 }
 0x23d   :  { %1268 = vmatmul.mubr.msk.bf16.vlgmr.msra.gmra.mrb[12].mxu1 %vm1044_vm2, %v1004_v39 }
 0x310   :  { %v1082_v41 = vpop.f32.mrb[12].mxu1 }
 0x311   :  { %v1083_v42 = vadd.f32 %v1226_v40, %v1082_v41  ;;  %v1269_v43 = vpop.f32.mrb[13].mxu1 }
 0x312   :  { %v1085_v44 = vpop.f32.mrb[14].mxu1 }
 0x313   :  { %1088 = vst [vmem:[#allocation2] sm:$0xff] %v1083_v42  ;;  %v1270_v45 = vpop.f32.mrb[15].mxu1 }
 0x314   :  { %1470 = shalt.err (!%p1467_p4)
}
 0x315   :  { %s1471_s6 = scalar_lea.hbm %s1933_s7, 128 }
 0x316   :  { %p1472_p5 = scmp.ne.s32.totalorder %s1933_s7, %s1471_s6  ;;  %p1475_p6 = scmp.lt.u32.totalorder %s1471_s6, %s1933_s7 }
 0x318   :  { %p1477_p7 = pnand %p1475_p6, %p1472_p5 }
 0x31a   :  { %1480 = shalt.err (!%p1477_p7)
}
 0x31b   :  { %1098 = dma.vmem_to_hbm [thread:$0]  %s1096_s14, 128, %s1933_s7, [#allocation3]  }
 0x31c   :  { %1481 = dma.done.wait [#allocation3], 128  }
 0x31d   :  { %1482 = vsyncadd [#allocation3], 4294967168 }
 0x31e   :  { %1102 = vsyncpa [#allocation3], 1 }

</bundles_post_ra>
